<compile_context>
chip_gen: v7x
topology: tpu7x:2x2x1
jax: 0.10.0
libtpu: 0.0.40
codegen_flags: <defaults>
</compile_context>

<pallas_src>
import jax
import jax.numpy as jnp
from jax.experimental import pallas as pl
from jax.experimental.pallas import tpu as pltpu


def _round_up(x, m):
    return ((x + m - 1) // m) * m


def _ffn_kernel(x_ref, w1_ref, b1_ref, w2_ref, b2_ref, o_ref, acc_ref):
    j = pl.program_id(1)

    @pl.when(j == 0)
    def _init():
        acc_ref[...] = jnp.zeros_like(acc_ref)

    # Matmul 1 on the MXU (bf16 in, f32 accumulate); bias + ReLU in f32 (VPU).
    h = jnp.dot(x_ref[...], w1_ref[...], preferred_element_type=jnp.float32)
    h = jnp.maximum(h + b1_ref[...], 0.0)
    # Matmul 2: accumulate this d_ff chunk's contribution in f32.
    acc_ref[...] += jnp.dot(h.astype(w2_ref.dtype), w2_ref[...],
                            preferred_element_type=jnp.float32)

    @pl.when(j == pl.num_programs(1) - 1)
    def _finalize():
        o_ref[...] = (acc_ref[...] + b2_ref[...]).astype(o_ref.dtype)


def positionwise_feed_forward(x, w1, b1, w2, b2, *, tile_rows=None, tile_ff=None,
                              compute_dtype=jnp.bfloat16):
    """x: (..., d_model); w1: (d_model, d_ff); b1: (d_ff,); w2: (d_ff, d_model); b2: (d_model,)."""
    d_model = x.shape[-1]
    d_ff = w1.shape[1]
    lead_shape = x.shape[:-1]
    out_dtype = x.dtype

    x2 = x.reshape(-1, d_model).astype(compute_dtype)   # free reshape + bf16 MXU feed
    n_rows = x2.shape[0]
    in_item = jnp.dtype(compute_dtype).itemsize
    out_item = jnp.dtype(out_dtype).itemsize

    # ---- generation-aware VMEM budget (64 MiB on v7x, 128 MiB on v5e/v6e) ----
    vmem_cap = 64 * 1024 * 1024  # conservative fallback (v7x per-TC)
    try:
        info = pltpu.get_tpu_info()
        cap = (getattr(info, "vmem_capacity_bytes", None)
               or getattr(info, "vmem_size_bytes", None))
        if cap:
            vmem_cap = int(cap)
    except Exception:
        pass
    budget = int(0.65 * vmem_cap)

    def vmem_est(tr, tf):
        f32 = 4
        return (2 * tr * d_model * in_item          # x tile (double-buffered)
                + 2 * d_model * tf * in_item        # W1 chunk (double-buffered)
                + 2 * max(tf, 128) * f32            # b1 chunk
                + 2 * tf * d_model * in_item        # W2 chunk (double-buffered)
                + 2 * max(d_model, 128) * f32       # b2
                + 2 * tr * d_model * out_item       # out tile (double-buffered)
                + tr * d_model * f32                # f32 accumulator scratch
                + tr * tf * (f32 + in_item))        # hidden f32 + bf16 temporaries

    # ---- MXU-friendly tile sizing ----
    if tile_rows is None:
        # 512 rows (multiple of the 256 MXU dim) or full extent for small inputs.
        tile_rows = n_rows if n_rows <= 512 else 512
    if tile_ff is None:
        tile_ff = _round_up(d_ff, 128)
        while tile_ff > 128 and vmem_est(tile_rows, tile_ff) > budget:
            tile_ff = max(128, _round_up(tile_ff // 2, 128))
        while tile_rows > 8 and vmem_est(tile_rows, tile_ff) > budget:
            tile_rows = max(8, _round_up(tile_rows // 2, 8))

    # Zero-pad the d_ff dimension of the weights to a multiple of tile_ff
    # (exact: relu(x@0 + 0) = 0 and W2's padded rows are zero).
    d_ff_pad = _round_up(d_ff, tile_ff)
    w1c = w1.astype(compute_dtype)
    w2c = w2.astype(compute_dtype)
    b1f = b1.astype(jnp.float32)
    if d_ff_pad != d_ff:
        w1c = jnp.pad(w1c, ((0, 0), (0, d_ff_pad - d_ff)))
        b1f = jnp.pad(b1f, ((0, d_ff_pad - d_ff),))
        w2c = jnp.pad(w2c, ((0, d_ff_pad - d_ff), (0, 0)))
    b1_2d = b1f.reshape(1, d_ff_pad)
    b2_2d = b2.astype(jnp.float32).reshape(1, d_model)

    num_row_tiles = pl.cdiv(n_rows, tile_rows)   # partial last block handled by Pallas
    num_ff_tiles = d_ff_pad // tile_ff
    grid = (num_row_tiles, num_ff_tiles)

    est_bytes = vmem_est(tile_rows, tile_ff)
    vmem_limit = min(max(int(1.3 * est_bytes), 32 * 1024 * 1024),
                     int(0.92 * vmem_cap))

    flops = 4 * n_rows * d_model * d_ff          # two matmuls, 2 flops/MAC
    bytes_accessed = (x2.size * in_item
                      + n_rows * d_model * out_item
                      + num_row_tiles * (w1c.size + w2c.size) * in_item
                      + (b1_2d.size + b2_2d.size) * 4)

    # TODO(synk): if d_model is not a multiple of 128, output stores are masked
    # (vst.msk); for production shapes d_model is 128-aligned so this is moot.
    out = pl.pallas_call(
        _ffn_kernel,
        out_shape=jax.ShapeDtypeStruct((n_rows, d_model), out_dtype),
        grid_spec=pltpu.PrefetchScalarGridSpec(
            num_scalar_prefetch=0,
            grid=grid,
            in_specs=[
                pl.BlockSpec((tile_rows, d_model), lambda i, j: (i, 0)),   # x rows
                pl.BlockSpec((d_model, tile_ff), lambda i, j: (0, j)),     # W1 chunk
                pl.BlockSpec((1, tile_ff), lambda i, j: (0, j)),           # b1 chunk
                pl.BlockSpec((tile_ff, d_model), lambda i, j: (j, 0)),     # W2 chunk
                pl.BlockSpec((1, d_model), lambda i, j: (0, 0)),           # b2
            ],
            out_specs=pl.BlockSpec((tile_rows, d_model), lambda i, j: (i, 0)),
            scratch_shapes=[pltpu.VMEM((tile_rows, d_model), jnp.float32)],
        ),
        compiler_params=pltpu.CompilerParams(
            dimension_semantics=("parallel", "arbitrary"),
            vmem_limit_bytes=vmem_limit,
        ),
        cost_estimate=pl.CostEstimate(
            flops=flops, transcendentals=0, bytes_accessed=bytes_accessed),
    )(x2, w1c, b1_2d, w2c, b2_2d)

    return out.reshape(*lead_shape, d_model)


if __name__ == "__main__":
    def ref_ffn(x, w1, b1, w2, b2):
        h = jnp.maximum(
            jnp.dot(x, w1, precision=jax.lax.Precision.HIGHEST) + b1, 0.0)
        return jnp.dot(h, w2, precision=jax.lax.Precision.HIGHEST) + b2

    # ---- Test 1: small smoke-test shapes implied by the module ----
    B, S, D_MODEL, D_FF = 2, 8, 32, 64
    kx, kw1, kb1, kw2, kb2 = jax.random.split(jax.random.PRNGKey(0), 5)
    x = jax.random.normal(kx, (B, S, D_MODEL), dtype=jnp.float32)
    # Weights stored as (in, out) == PyTorch linear.weight.T; same math.
    w1 = jax.random.normal(kw1, (D_MODEL, D_FF), dtype=jnp.float32) / jnp.sqrt(D_MODEL)
    b1 = jax.random.normal(kb1, (D_FF,), dtype=jnp.float32) * 0.1
    w2 = jax.random.normal(kw2, (D_FF, D_MODEL), dtype=jnp.float32) / jnp.sqrt(D_FF)
    b2 = jax.random.normal(kb2, (D_MODEL,), dtype=jnp.float32) * 0.1

    out = jax.block_until_ready(positionwise_feed_forward(x, w1, b1, w2, b2))
    ref = ref_ffn(x, w1, b1, w2, b2)
    assert out.shape == x.shape
    # bf16 MXU feed with f32 accumulation vs f32 HIGHEST reference.
    assert jnp.allclose(out, ref, atol=3e-2, rtol=3e-2), "mismatch vs reference (test 1)"

    # ---- Test 2: exercise both grid axes (multiple row tiles + d_ff accumulation) ----
    B2, S2, DM2, DF2 = 2, 24, 128, 256
    kx, kw1, kb1, kw2, kb2 = jax.random.split(jax.random.PRNGKey(1), 5)
    x2i = jax.random.normal(kx, (B2, S2, DM2), dtype=jnp.float32)
    w1b = jax.random.normal(kw1, (DM2, DF2), dtype=jnp.float32) / jnp.sqrt(DM2)
    b1b = jax.random.normal(kb1, (DF2,), dtype=jnp.float32) * 0.1
    w2b = jax.random.normal(kw2, (DF2, DM2), dtype=jnp.float32) / jnp.sqrt(DF2)
    b2b = jax.random.normal(kb2, (DM2,), dtype=jnp.float32) * 0.1

    out2 = jax.block_until_ready(
        positionwise_feed_forward(x2i, w1b, b1b, w2b, b2b, tile_rows=16, tile_ff=128))
    ref2 = ref_ffn(x2i, w1b, b1b, w2b, b2b)
    assert out2.shape == x2i.shape
    assert jnp.allclose(out2, ref2, atol=3e-2, rtol=3e-2), "mismatch vs reference (test 2)"

    print("KERNEL_OK")
</pallas_src>

<mosaic_0001>
module attributes {stable_mosaic.version = 11 : i64} {
  func.func @_ffn_kernel(%arg0: i32, %arg1: i32, %arg2: memref<16x32xbf16, #tpu.memory_space<vmem>>, %arg3: memref<32x128xbf16, #tpu.memory_space<vmem>>, %arg4: memref<1x128xf32, #tpu.memory_space<vmem>>, %arg5: memref<128x32xbf16, #tpu.memory_space<vmem>>, %arg6: memref<1x32xf32, #tpu.memory_space<vmem>>, %arg7: memref<16x32xf32, #tpu.memory_space<vmem>>, %arg8: memref<16x32xf32, #tpu.memory_space<vmem>>) attributes {dimension_semantics = [#tpu.dimension_semantics<parallel>, #tpu.dimension_semantics<arbitrary>], iteration_bounds = array<i64: 1, 1>, scalar_prefetch = 0 : i64, scratch_operands = 1 : i64, tpu.core_type = #tpu.core_type<tc>, window_params = [{transform_indices = @transform_0, window_bounds = array<i64: 16, 32>}, {transform_indices = @transform_1, window_bounds = array<i64: 32, 128>}, {transform_indices = @transform_2, window_bounds = array<i64: 1, 128>}, {transform_indices = @transform_3, window_bounds = array<i64: 128, 32>}, {pipeline_mode = #tpu.pipeline_mode<synchronous>, transform_indices = @transform_4, window_bounds = array<i64: 1, 32>}, {transform_indices = @transform_5, window_bounds = array<i64: 16, 32>}]} {
    %c0_i32 = arith.constant 0 : i32
    %0 = arith.cmpi eq, %arg1, %c0_i32 : i32
    %1 = arith.extui %0 : i1 to i32
    %c0_i32_0 = arith.constant 0 : i32
    %2 = arith.cmpi ne, %1, %c0_i32_0 : i32
    scf.if %2 {
      %cst_16 = arith.constant 0.000000e+00 : f32
      %20 = vector.broadcast %cst_16 : f32 to vector<16x32xf32>
      %c0_17 = arith.constant 0 : index
      %c0_18 = arith.constant 0 : index
      %21 = vector.load %arg8[%c0_17, %c0_18] : memref<16x32xf32, #tpu.memory_space<vmem>>, vector<16x32xf32>
      tpu.vector_store %arg8[%c0_17, %c0_18], %20 {strides = array<i32>} : memref<16x32xf32, #tpu.memory_space<vmem>>, vector<16x32xf32>,
    } else {
    }
    %c0 = arith.constant 0 : index
    %c0_1 = arith.constant 0 : index
    %3 = vector.load %arg2[%c0, %c0_1] : memref<16x32xbf16, #tpu.memory_space<vmem>>, vector<16x32xbf16>
    %c0_2 = arith.constant 0 : index
    %c0_3 = arith.constant 0 : index
    %4 = vector.load %arg3[%c0_2, %c0_3] : memref<32x128xbf16, #tpu.memory_space<vmem>>, vector<32x128xbf16>
    %cst = arith.constant dense<0.000000e+00> : vector<16x128xf32>
    %5 = tpu.matmul %3, %4, %cst {dimension_numbers = #tpu.dot_dimension_numbers<[1], [0], [0], [1], [0, 0, 1, 1], [], []>} : vector<16x32xbf16>, vector<32x128xbf16>, vector<16x128xf32> -> vector<16x128xf32>
    %c0_4 = arith.constant 0 : index
    %c0_5 = arith.constant 0 : index
    %6 = vector.load %arg4[%c0_4, %c0_5] : memref<1x128xf32, #tpu.memory_space<vmem>>, vector<1x128xf32>
    %7 = vector.broadcast %6 : vector<1x128xf32> to vector<16x128xf32>
    %8 = arith.addf %5, %7 : vector<16x128xf32>
    %cst_6 = arith.constant 0.000000e+00 : f32
    %9 = vector.broadcast %cst_6 : f32 to vector<16x128xf32>
    %10 = arith.maximumf %8, %9 : vector<16x128xf32>
    %c0_7 = arith.constant 0 : index
    %c0_8 = arith.constant 0 : index
    %11 = vector.load %arg8[%c0_7, %c0_8] : memref<16x32xf32, #tpu.memory_space<vmem>>, vector<16x32xf32>
    %12 = arith.truncf %10 : vector<16x128xf32> to vector<16x128xbf16>
    %c0_9 = arith.constant 0 : index
    %c0_10 = arith.constant 0 : index
    %13 = vector.load %arg5[%c0_9, %c0_10] : memref<128x32xbf16, #tpu.memory_space<vmem>>, vector<128x32xbf16>
    %cst_11 = arith.constant dense<0.000000e+00> : vector<16x32xf32>
    %14 = tpu.matmul %12, %13, %cst_11 {dimension_numbers = #tpu.dot_dimension_numbers<[1], [0], [0], [1], [0, 0, 1, 1], [], []>} : vector<16x128xbf16>, vector<128x32xbf16>, vector<16x32xf32> -> vector<16x32xf32>
    %15 = arith.addf %11, %14 : vector<16x32xf32>
    %c0_12 = arith.constant 0 : index
    %c0_13 = arith.constant 0 : index
    %16 = vector.load %arg8[%c0_12, %c0_13] : memref<16x32xf32, #tpu.memory_space<vmem>>, vector<16x32xf32>
    tpu.vector_store %arg8[%c0_12, %c0_13], %15 {strides = array<i32>} : memref<16x32xf32, #tpu.memory_space<vmem>>, vector<16x32xf32>,
    %c0_i32_14 = arith.constant 0 : i32
    %17 = arith.cmpi eq, %arg1, %c0_i32_14 : i32
    %18 = arith.extui %17 : i1 to i32
    %c0_i32_15 = arith.constant 0 : i32
    %19 = arith.cmpi ne, %18, %c0_i32_15 : i32
    scf.if %19 {
      %c0_16 = arith.constant 0 : index
      %c0_17 = arith.constant 0 : index
      %20 = vector.load %arg8[%c0_16, %c0_17] : memref<16x32xf32, #tpu.memory_space<vmem>>, vector<16x32xf32>
      %c0_18 = arith.constant 0 : index
      %c0_19 = arith.constant 0 : index
      %21 = vector.load %arg6[%c0_18, %c0_19] : memref<1x32xf32, #tpu.memory_space<vmem>>, vector<1x32xf32>
      %22 = vector.broadcast %21 : vector<1x32xf32> to vector<16x32xf32>
      %23 = arith.addf %20, %22 : vector<16x32xf32>
      %c0_20 = arith.constant 0 : index
      %c0_21 = arith.constant 0 : index
      %24 = vector.load %arg7[%c0_20, %c0_21] : memref<16x32xf32, #tpu.memory_space<vmem>>, vector<16x32xf32>
      tpu.vector_store %arg7[%c0_20, %c0_21], %23 {strides = array<i32>} : memref<16x32xf32, #tpu.memory_space<vmem>>, vector<16x32xf32>,
    } else {
    }
    return
  }
  func.func @transform_0(%arg0: i32, %arg1: i32) -> (i32, i32) {
    %c0_i32 = arith.constant 0 : i32
    %c0_i32_0 = arith.constant 0 : i32
    return %arg0, %c0_i32 : i32, i32
  }
  func.func @transform_1(%arg0: i32, %arg1: i32) -> (i32, i32) {
    %c0_i32 = arith.constant 0 : i32
    %c0_i32_0 = arith.constant 0 : i32
    return %c0_i32, %arg1 : i32, i32
  }
  func.func @transform_2(%arg0: i32, %arg1: i32) -> (i32, i32) {
    %c0_i32 = arith.constant 0 : i32
    %c0_i32_0 = arith.constant 0 : i32
    return %c0_i32, %arg1 : i32, i32
  }
  func.func @transform_3(%arg0: i32, %arg1: i32) -> (i32, i32) {
    %c0_i32 = arith.constant 0 : i32
    %c0_i32_0 = arith.constant 0 : i32
    return %arg1, %c0_i32 : i32, i32
  }
  func.func @transform_4(%arg0: i32, %arg1: i32) -> (i32, i32) {
    %c0_i32 = arith.constant 0 : i32
    %c0_i32_0 = arith.constant 0 : i32
    %c0_i32_1 = arith.constant 0 : i32
    return %c0_i32, %c0_i32_0 : i32, i32
  }
  func.func @transform_5(%arg0: i32, %arg1: i32) -> (i32, i32) {
    %c0_i32 = arith.constant 0 : i32
    %c0_i32_0 = arith.constant 0 : i32
    return %arg0, %c0_i32 : i32, i32
  }
}

</mosaic_0001>

<bundles_post_ra>
// kernel: tpu_custom_call.1
= control target key start
LH: loop header
LB: loop body
LE: loop exit
PB: predicated region body
PF: predicated region fallthrough
CT: control target
= control target key end

     0   :  { %v344_v1 = vmov 0.0   ;;  %vm345_vm0 = vmmov 0   ;;  %vm26_vm1 = vcmask 261120   ;;  %s437_s0 = inlined_call_operand.vmem [shape: bf16[16,32], index: 0, kind: input, shape index: {}]   ;;  %s438_s1 = inlined_call_operand.vmem [shape: bf16[32,128], index: 1, kind: input, shape index: {}]   ;;  %s439_s2 = inlined_call_operand.vmem [shape: f32[1,128], index: 2, kind: input, shape index: {}]   ;;  %s440_s3 = inlined_call_operand.vmem [shape: bf16[128,32], index: 3, kind: input, shape index: {}]   ;;  %s441_s4 = inlined_call_operand.vmem [shape: f32[1,32], index: 4, kind: input, shape index: {}]   ;;  %s442_s5 = inlined_call_operand.hbm [shape: f32[16,32], index: 5, kind: output, shape index: {}]  }
   0x1   :  { %v309_v0 = vld [vmem:[%s438_s1] sm:$0xff]   ;;  %276 = vmatprep.subr.bf16.mxu0 %v344_v1  ;;  %284 = vmatprep.subr.bf16.mxu1 %v344_v1  ;;  %v310_v2 = vld [vmem:[%s438_s1 + $0x8] sm:$0xff]   ;;  %27 = vst.msk [vmem:[#allocation2] sm:$0xff] %vm26_vm1, %v344_v1  ;;  %28 = vst.msk [vmem:[#allocation2 + $0x8] sm:$0xff] %vm26_vm1, %v344_v1 }
   0x2   :  { %277 = vmatpush3.bf16.msra.mxu0 %v309_v0  ;;  %280 = vmatprep.mubr.msk.bf16.mxu0 %vm345_vm0, %v344_v1  ;;  %v312_v3 = vld [vmem:[%s440_s3] sm:$0xff]   ;;  %v313_v5 = vld [vmem:[%s440_s3 + $0x8] sm:$0xff]   ;;  %v314_v6 = vld [vmem:[%s440_s3 + $0x10] sm:$0xff]  }
   0x3   :  { %278 = vmatprep.subr.bf16.mxu0 %v344_v1  ;;  %300 = vmatprep.mubr.msk.bf16.mxu1 %vm345_vm0, %v344_v1  ;;  %v311_v4 = vld [vmem:[%s437_s0] sm:$0xff]  }
   0x4   :  { %285 = vmatpush3.bf16.msra.mxu1 %v312_v3 }
   0x5   :  { %286 = vmatprep.subr.bf16.mxu1 %v344_v1 }
   0x6   :  { %279 = vmatpush3.bf16.msra.mxu0 %v310_v2 }
   0x8   :  { %287 = vmatpush3.bf16.msra.mxu1 %v313_v5 }
   0x9   :  { %281 = vmatmul.mubr.msk.bf16.vlgmr.msra.gmra.mrb[0].mxu0 %vm26_vm1, %v311_v4  ;;  %288 = vmatprep.subr.bf16.mxu1 %v344_v1 }
   0xa   :  { %10 = vsyncpa [#allocation4], 0  ;;  %v315_v7 = vld [vmem:[%s440_s3 + $0x18] sm:$0xff]   ;;  %v316_v8 = vld [vmem:[%s440_s3 + $0x20] sm:$0xff]   ;;  %s346_s15 = smov [#allocation3]  }
   0xb   :  { %v317_v9 = vld [vmem:[%s440_s3 + $0x28] sm:$0xff]   ;;  %v318_v10 = vld [vmem:[%s440_s3 + $0x30] sm:$0xff]   ;;  %v319_v11 = vld [vmem:[%s440_s3 + $0x38] sm:$0xff]   ;;  %s239_s16 = sshll.u32 %s346_s15, 4  ;;  %s240_s16 = int_to_ptr.vmem [resolvable:$true] %s239_s16 }
   0xc   :  { %289 = vmatpush3.bf16.msra.mxu1 %v314_v6  ;;  %v250_v12 = vld [vmem:[%s439_s2] ss:$0 sm:$0xff]  ;;  %v107_v24 = vld [vmem:[#allocation2 + $0x8] sm:$0xff]  ;;  %s320_s17 = scalar_lea.vmem %s240_s16, 256  ;;  %p325_p1 = scmp.lt.s32.totalorder %s240_s16, %s240_s16 }
   0xd   :  { %290 = vmatprep.subr.bf16.mxu1 %v344_v1  ;;  %v106_v22 = vld [vmem:[#allocation2] sm:$0xff]  ;;  %p321_p0 = scmp.ne.s32.totalorder %s240_s16, %s320_s17  ;;  %p326_p2 = scmp.lt.s32.totalorder %s320_s17, %s320_s17 }
   0xe   :  { %v263_v30 = vld [vmem:[%s441_s4] ss:$0 sm:$0xff] }
   0xf   :  { %p327_p3 = por %p326_p2, %p325_p1 }
  0x10   :  { %291 = vmatpush3.bf16.msra.mxu1 %v315_v7 }
  0x11   :  { %292 = vmatprep.subr.bf16.mxu1 %v344_v1  ;;  %p328_p4 = pnand %p327_p3, %p321_p0 }
  0x14   :  { %293 = vmatpush3.bf16.msra.mxu1 %v316_v8 }
  0x15   :  { %294 = vmatprep.subr.bf16.mxu1 %v344_v1 }
  0x18   :  { %295 = vmatpush3.bf16.msra.mxu1 %v317_v9 }
  0x19   :  { %296 = vmatprep.subr.bf16.mxu1 %v344_v1 }
  0x1c   :  { %297 = vmatpush3.bf16.msra.mxu1 %v318_v10 }
  0x1d   :  { %298 = vmatprep.subr.bf16.mxu1 %v344_v1 }
  0x20   :  { %299 = vmatpush3.bf16.msra.mxu1 %v319_v11 }
  0xdc   :  { %v97_v13 = vpop.f32.mrb[0].mxu0 }
  0xdd   :  { %v98_v14 = vadd.f32 %v250_v12, %v97_v13  ;;  %v282_v15 = vpop.f32.mrb[1].mxu0 }
  0xde   :  { %v100_v16 = vpop.f32.mrb[2].mxu0 }
  0xdf   :  { %v101_v17 = vadd.f32 %v250_v12, %v100_v16  ;;  %v283_v18 = vpop.f32.mrb[3].mxu0  ;;  %v104_v19 = vmax.f32 %v98_v14, 0.0 }
  0xe1   :  { %v105_v20 = vmax.f32 %v101_v17, 0.0 }
  0xe3   :  { %v108_v21 = vpack.c.bf16 %v105_v20, %v104_v19 }
  0xe5   :  { %301 = vmatmul.mubr.bf16.vlgmr.msra.gmra.mrb[0].mxu1 %v108_v21 }
 0x1b8   :  { %v207_v23 = vpop.f32.mrb[0].mxu1 }
 0x1b9   :  { %v214_v25 = vadd.f32 %v207_v23, %v106_v22  ;;  %v302_v26 = vpop.f32.mrb[1].mxu1 }
 0x1ba   :  { %v210_v27 = vpop.f32.mrb[2].mxu1 }
 0x1bb   :  { %216 = vst.msk [vmem:[#allocation2] sm:$0xff] %vm26_vm1, %v214_v25  ;;  %v215_v28 = vadd.f32 %v210_v27, %v107_v24  ;;  %v303_v29 = vpop.f32.mrb[3].mxu1 }
 0x1bd   :  { %217 = vst.msk [vmem:[#allocation2 + $0x8] sm:$0xff] %vm26_vm1, %v215_v28 }
 0x1c2   :  { %v221_v31 = vld [vmem:[#allocation2] sm:$0xff] }
 0x1c3   :  { %v230_v32 = vadd.f32 %v263_v30, %v221_v31 }
 0x1c4   :  { %v222_v33 = vld [vmem:[#allocation2 + $0x8] sm:$0xff] }
 0x1c5   :  { %v231_v34 = vadd.f32 %v263_v30, %v222_v33  ;;  %232 = vst.msk [vmem:[#allocation3] sm:$0xff] %vm26_vm1, %v230_v32 }
 0x1c7   :  { %233 = vst.msk [vmem:[#allocation3 + $0x8] sm:$0xff] %vm26_vm1, %v231_v34 }
 0x1c8   :  { %331 = shalt.err (!%p328_p4)
}
 0x1c9   :  { %s332_s19 = scalar_lea.hbm %s442_s5, 256 }
 0x1ca   :  { %p333_p5 = scmp.ne.s32.totalorder %s442_s5, %s332_s19  ;;  %p336_p6 = scmp.lt.u32.totalorder %s332_s19, %s442_s5 }
 0x1cc   :  { %p338_p7 = pnand %p336_p6, %p333_p5 }
 0x1ce   :  { %341 = shalt.err (!%p338_p7)
}
 0x1cf   :  { %s347_s24 = smov 128   ;;  %s348_s25 = smov 8  }
 0x1d0   :  { %245 = dma.vmem_to_hbm [thread:$0]  %s240_s16, 256, %s442_s5, [#allocation4], %s347_s24, %s347_s24, %s348_s25  }
 0x1d1   :  { %342 = dma.done.wait [#allocation4], 256  }
 0x1d2   :  { %343 = vsyncadd [#allocation4], 4294967040 }
 0x1d3   :  { %249 = vsyncpa [#allocation4], 1 }

</bundles_post_ra>
